<compile_context>
chip_gen: v7x
topology: tpu7x:2x2x1
jax: 0.10.0
libtpu: 0.0.40
codegen_flags: <defaults>
</compile_context>

<pallas_src>
import functools

import numpy as np
import jax
import jax.numpy as jnp
from jax.experimental import pallas as pl
from jax.experimental.pallas import tpu as pltpu


_MAX_E_TILE = 32768  # (8 padded sublanes * 4 B * E_TILE) * 2 buffers = 2 MiB VMEM


def _round_up(x, m):
    return ((x + m - 1) // m) * m


def edge_vertex_indices(faces):
    """Unique undirected edges (E, 2) from faces (F, L). Demo/test glue only."""
    F, L = faces.shape
    edges = []
    for l in range(L):
        edges.append(np.stack([faces[:, l], faces[:, (l + 1) % L]], axis=1))
    edges = np.concatenate(edges, axis=0)
    edges = np.sort(edges, axis=1)
    edges = np.unique(edges, axis=0)
    return edges.astype(np.int32)


def _repulsion_kernel(d_ref, out_ref, *, threshold2):
    # grid = (B, nE); batch axis "parallel", edge-tile axis "arbitrary" (accumulate).
    @pl.when(pl.program_id(1) == 0)
    def _():
        out_ref[...] = jnp.zeros_like(out_ref)

    dx = d_ref[0, 0:1, :]                       # (1, E_TILE)
    dy = d_ref[0, 1:2, :]
    dz = d_ref[0, 2:3, :]
    d2 = dx * dx + dy * dy + dz * dz            # squared edge length, VPU only
    inv = 1.0 / (d2 + 1e-6)
    tmp = jnp.where(d2 < threshold2, inv, 0.0)  # padded lanes have d2 >= threshold2 -> 0
    out_ref[...] += jnp.sum(tmp, axis=1, keepdims=True)[None]   # (1, 1, 1)


@functools.partial(jax.jit, static_argnames=("threshold", "reduction"))
def simple_mesh_repulsion_loss(verts, edges, *, threshold, reduction="mean"):
    """verts: (B, N, 3) float; edges: (B, E, 2) int. Matches SimpleMeshRepulsionLoss.forward."""
    verts = jnp.asarray(verts, jnp.float32)
    edges = jnp.asarray(edges, jnp.int32)
    B, N, _ = verts.shape
    E = edges.shape[1]

    E_TILE = min(_round_up(E, 128), _MAX_E_TILE)
    E_pad = _round_up(E, E_TILE)
    n_e = E_pad // E_TILE

    # ---- wrapper glue (fuses in XLA): gather endpoints, diff, pad, (B, 3, E_pad) layout ----
    pad = E_pad - E
    e0 = jnp.pad(edges[..., 0], ((0, 0), (0, pad)))
    e1 = jnp.pad(edges[..., 1], ((0, 0), (0, pad)))
    v0 = jnp.take_along_axis(verts, e0[..., None], axis=1)        # (B, E_pad, 3)
    v1 = jnp.take_along_axis(verts, e1[..., None], axis=1)
    d = v0 - v1
    # Padded lanes: force d2 >= threshold^2 so the in-kernel where() zeroes them (no mask stream).
    big = abs(float(threshold)) + 1.0
    valid = (jnp.arange(E_pad) < E)[None, :, None]
    d = jnp.where(valid, d, big)
    d = jnp.transpose(d, (0, 2, 1))                               # (B, 3, E_pad)

    kernel = functools.partial(
        _repulsion_kernel, threshold2=float(threshold) * float(threshold))

    sums = pl.pallas_call(
        kernel,
        out_shape=jax.ShapeDtypeStruct((B, 1, 1), jnp.float32),
        grid=(B, n_e),
        in_specs=[pl.BlockSpec((1, 3, E_TILE), lambda b, e: (b, 0, e))],
        out_specs=pl.BlockSpec((1, 1, 1), lambda b, e: (b, 0, 0)),
        compiler_params=pltpu.CompilerParams(
            dimension_semantics=("parallel", "arbitrary")),
    )(d)
    sums = sums[:, 0, 0]                                          # (B,) per-batch sum of tmp

    if reduction in ("mean", "none"):
        per_batch = sums / jnp.float32(E)                         # per-batch tmp.mean()
        return jnp.mean(per_batch) if reduction == "mean" else per_batch
    if reduction == "sum":
        return jnp.mean(sums)                                     # per-batch sum, mean over B
    # TODO(synk): reduction='max' needs a per-batch max reduction; not implemented in-kernel.
    raise NotImplementedError(reduction)


def _ref_loss(verts, edges, threshold):
    """Pure numpy reference with the same semantics as the PyTorch module (reduction='mean')."""
    thr2 = threshold * threshold
    B = verts.shape[0]
    per_b = []
    for b in range(B):
        v = np.asarray(verts[b], np.float32)
        e = np.asarray(edges[b])
        diff = v[e[:, 0]] - v[e[:, 1]]
        d2 = np.sum(diff * diff, axis=-1)
        tmp = 1.0 / (d2 + 1e-6)
        tmp = np.where(d2 < thr2, tmp, 0.0)
        per_b.append(tmp.mean())
    return float(np.mean(per_b))


if __name__ == "__main__":
    key = jax.random.PRNGKey(0)
    B = 2

    # Build a small 4x4 grid mesh: N = 16 vertices, 18 triangles -> E = 33 unique edges.
    gw = 4
    N = gw * gw
    faces = []
    for i in range(gw - 1):
        for j in range(gw - 1):
            v00 = i * gw + j
            v01 = v00 + 1
            v10 = v00 + gw
            v11 = v10 + 1
            faces.append([v00, v10, v11])
            faces.append([v00, v11, v01])
    faces = np.asarray(faces, dtype=np.int32)                     # (F, 3)
    ev = edge_vertex_indices(faces)                               # (E, 2)
    edges = np.broadcast_to(ev, (B,) + ev.shape).copy()           # (B, E, 2)

    verts = jax.random.normal(key, (B, N, 3), dtype=jnp.float32)  # (B, N, 3)
    threshold = 2.0

    loss = simple_mesh_repulsion_loss(verts, jnp.asarray(edges), threshold=threshold)
    loss = jax.block_until_ready(loss)

    ref = _ref_loss(np.asarray(verts), edges, threshold)
    assert np.allclose(np.asarray(loss), ref, rtol=1e-5, atol=1e-6), (loss, ref)
    print("KERNEL_OK")
</pallas_src>

<mosaic_0001>
module attributes {stable_mosaic.version = 11 : i64} {
  func.func @_repulsion_kernel(%arg0: i32, %arg1: i32, %arg2: memref<1x3x128xf32, #tpu.memory_space<vmem>>, %arg3: memref<1x1x1xf32, #tpu.memory_space<vmem>>) attributes {dimension_semantics = [#tpu.dimension_semantics<parallel>, #tpu.dimension_semantics<arbitrary>], iteration_bounds = array<i64: 2, 1>, scalar_prefetch = 0 : i64, scratch_operands = 0 : i64, tpu.core_type = #tpu.core_type<tc>, window_params = [{transform_indices = @transform_0, window_bounds = array<i64: 1, 3, 128>}, {transform_indices = @transform_1, window_bounds = array<i64: 1, 1, 1>}]} {
    %c0_i32 = arith.constant 0 : i32
    %0 = arith.cmpi eq, %arg1, %c0_i32 : i32
    %1 = arith.extui %0 : i1 to i32
    %c0_i32_0 = arith.constant 0 : i32
    %2 = arith.cmpi ne, %1, %c0_i32_0 : i32
    scf.if %2 {
      %cst_17 = arith.constant 0.000000e+00 : f32
      %28 = vector.broadcast %cst_17 : f32 to vector<1x1x1xf32>
      %c0_18 = arith.constant 0 : index
      %c0_19 = arith.constant 0 : index
      %c0_20 = arith.constant 0 : index
      %29 = vector.load %arg3[%c0_18, %c0_19, %c0_20] : memref<1x1x1xf32, #tpu.memory_space<vmem>>, vector<1x1x1xf32>
      tpu.vector_store %arg3[%c0_18, %c0_19, %c0_20], %28 {strides = array<i32>} : memref<1x1x1xf32, #tpu.memory_space<vmem>>, vector<1x1x1xf32>,
    } else {
    }
    %c0 = arith.constant 0 : index
    %c0_1 = arith.constant 0 : index
    %c0_2 = arith.constant 0 : index
    %3 = vector.load %arg2[%c0, %c0_1, %c0_2] : memref<1x3x128xf32, #tpu.memory_space<vmem>>, vector<1x1x128xf32>
    %4 = vector.shape_cast %3 : vector<1x1x128xf32> to vector<1x128xf32>
    %c0_3 = arith.constant 0 : index
    %c1 = arith.constant 1 : index
    %c0_4 = arith.constant 0 : index
    %5 = vector.load %arg2[%c0_3, %c1, %c0_4] : memref<1x3x128xf32, #tpu.memory_space<vmem>>, vector<1x1x128xf32>
    %6 = vector.shape_cast %5 : vector<1x1x128xf32> to vector<1x128xf32>
    %c0_5 = arith.constant 0 : index
    %c2 = arith.constant 2 : index
    %c0_6 = arith.constant 0 : index
    %7 = vector.load %arg2[%c0_5, %c2, %c0_6] : memref<1x3x128xf32, #tpu.memory_space<vmem>>, vector<1x1x128xf32>
    %8 = vector.shape_cast %7 : vector<1x1x128xf32> to vector<1x128xf32>
    %9 = arith.mulf %4, %4 : vector<1x128xf32>
    %10 = arith.mulf %6, %6 : vector<1x128xf32>
    %11 = arith.addf %9, %10 : vector<1x128xf32>
    %12 = arith.mulf %8, %8 : vector<1x128xf32>
    %13 = arith.addf %11, %12 : vector<1x128xf32>
    %cst = arith.constant 9.99999997E-7 : f32
    %14 = vector.broadcast %cst : f32 to vector<1x128xf32>
    %15 = arith.addf %13, %14 : vector<1x128xf32>
    %cst_7 = arith.constant 1.000000e+00 : f32
    %16 = vector.broadcast %cst_7 : f32 to vector<1x128xf32>
    %17 = arith.divf %16, %15 : vector<1x128xf32>
    %cst_8 = arith.constant 4.000000e+00 : f32
    %18 = vector.broadcast %cst_8 : f32 to vector<1x128xf32>
    %19 = arith.cmpf olt, %13, %18 : vector<1x128xf32>
    %cst_9 = arith.constant 0.000000e+00 : f32
    %20 = vector.broadcast %cst_9 : f32 to vector<1x128xf32>
    %21 = arith.select %19, %17, %20 : vector<1x128xi1>, vector<1x128xf32>
    %c0_10 = arith.constant 0 : index
    %c0_11 = arith.constant 0 : index
    %c0_12 = arith.constant 0 : index
    %22 = vector.load %arg3[%c0_10, %c0_11, %c0_12] : memref<1x1x1xf32, #tpu.memory_space<vmem>>, vector<1x1x1xf32>
    %cst_13 = arith.constant dense<0.000000e+00> : vector<1xf32>
    %23 = vector.multi_reduction <add>, %21, %cst_13 [1] : vector<1x128xf32> to vector<1xf32>
    %24 = vector.shape_cast %23 : vector<1xf32> to vector<1x1xf32>
    %25 = vector.shape_cast %24 : vector<1x1xf32> to vector<1x1x1xf32>
    %26 = arith.addf %22, %25 : vector<1x1x1xf32>
    %c0_14 = arith.constant 0 : index
    %c0_15 = arith.constant 0 : index
    %c0_16 = arith.constant 0 : index
    %27 = vector.load %arg3[%c0_14, %c0_15, %c0_16] : memref<1x1x1xf32, #tpu.memory_space<vmem>>, vector<1x1x1xf32>
    tpu.vector_store %arg3[%c0_14, %c0_15, %c0_16], %26 {strides = array<i32>} : memref<1x1x1xf32, #tpu.memory_space<vmem>>, vector<1x1x1xf32>,
    return
  }
  func.func @transform_0(%arg0: i32, %arg1: i32) -> (i32, i32, i32) {
    %c0_i32 = arith.constant 0 : i32
    %c0_i32_0 = arith.constant 0 : i32
    return %arg0, %c0_i32, %arg1 : i32, i32, i32
  }
  func.func @transform_1(%arg0: i32, %arg1: i32) -> (i32, i32, i32) {
    %c0_i32 = arith.constant 0 : i32
    %c0_i32_0 = arith.constant 0 : i32
    %c0_i32_1 = arith.constant 0 : i32
    return %arg0, %c0_i32, %c0_i32_0 : i32, i32, i32
  }
}

</mosaic_0001>

<bundles_post_ra>
// kernel: simple_mesh_repulsion_loss.1
= control target key start
LH: loop header
LB: loop body
LE: loop exit
PB: predicated region body
PF: predicated region fallthrough
CT: control target
= control target key end

     0   :  { %s288_s6 = smov 0   ;;  %s290_s7 = smov 0   ;;  %s323_s0 = inlined_call_operand.vmem [shape: f32[2,3,128], index: 0, kind: input, shape index: {}]   ;;  %s324_s1 = inlined_call_operand.vmem [shape: f32[2,1,1], index: 1, kind: output, shape index: {}]  }
   0x1   :  { %s292_s8 = smov 0  }
   0x2 LB: > { %s23_s9 = sadd.s32 1, %s271_s7  ;;  %p222_p0 = scmp.ge.s32.totalorder %s275_s8, 1  ;;  %s275_s8 = sphi %s292_s8, %s11_s8   ;;  %s271_s7 = sphi %s290_s7, %s326_s7   ;;  %s267_s6 = sphi %s288_s6, %s325_s6  }
   0x3   : > { %p25_p1 = scmp.ge.s32.totalorder %s23_s9, 2  ;;  %p103_p2 = scmp.lt.s32.totalorder %s275_s8, 3 }
   0x5   : > { %s328_s9 = smov (%p25_p1, %s23_s9), 0  ;;  %p104_p3 = pnand %p222_p0, %p103_p2 }
   0x6   : > { %p123_p4 = scmp.lt.s32.totalorder (!%p104_p3), %s267_s6, 1  ;;  %vm137_vm0 = vcmask (!%p104_p3), 0   ;;  %v277_v0 = vmov (!%p104_p3), 0.0   ;;  %vm153_vm2 = vcmask (!%p104_p3), 1040384  }
   0x7   : > { %107 = sbr.rel (%p104_p3) target bundleno = 184 (0xb8), region = 24 }
   0xe   : > { %s330_s6 = smov (!%p123_p4, %s267_s6), 1 }
   0xf   : > { %s223_s10 = sshll.u32 %s330_s6, 2  ;;  %s132_s13 = scalar_lea.vmem %s324_s1, %s330_s6 }
  0x10   : > { %s129_s16 = scalar_lea.vmem %s323_s0, %s223_s10  ;;  %138 = vst.msk [vmem:[%s132_s13] sm:$0x1] %vm137_vm0, %v277_v0 }
  0x11   : > { %v139_v1 = vld [vmem:[%s129_s16] sm:$0x1]  ;;  %v140_v2 = vld [vmem:[%s129_s16 + $0x1] sm:$0x1]  ;;  %v141_v3 = vld [vmem:[%s129_s16 + $0x2] sm:$0x1] }
  0x12   : > { %v142_v4 = vmul.f32 %v139_v1, %v139_v1  ;;  %v143_v5 = vmul.f32 %v140_v2, %v140_v2  ;;  %v145_v6 = vmul.f32 %v141_v3, %v141_v3 }
  0x14   : > { %v144_v7 = vadd.f32 %v143_v5, %v142_v4 }
  0x16   : > { %v146_v8 = vadd.f32 %v145_v6, %v144_v7 }
  0x17   : > { %v152_v13 = vld [vmem:[%s132_s13] sm:$0x1] }
  0x18   : > { %v147_v9 = vadd.f32 1e-06, %v146_v8  ;;  %vm150_vm1 = vcmp.lt.f32.partialorder %v146_v8, 4.0 }
  0x1a   : > { %251 = vrcp.f32 %v147_v9 }
  0x24   : > { %v252_v10 = vpop.eup %251 }
  0x25   : > { %v151_v11 = vsel %vm150_vm1, %v252_v10, 0.0 }
  0x26   : > { %v154_v12 = vsel %vm153_vm2, %v151_v11, 0.0 }
  0x27   : > { %155 = vadd.xlane.f32.xlu0 %v154_v12 }
  0xb4   : > { %v156_v14 = vpop.xlane.xlu0 %155 }
  0xb5   : > { %v157_v15 = vadd.f32 %v156_v14, %v152_v13 }
  0xb7   : > { %159 = vst.msk [vmem:[%s132_s13] sm:$0x1] %vm137_vm0, %v157_v15 }
  0xb8 PF: > { %s11_s8 = sadd.s32 1, %s275_s8   ;;  %s325_s6 = smov %s271_s7 }
  0xb9   : > { %p8_p5 = scmp.ge.s32.totalorder %s11_s8, 4   ;;  %s326_s7 = smov %s328_s9 }
  0xbb   :  { %10 = sbr.rel (!%p8_p5) target bundleno = 2 (0x2), region = 58 }

</bundles_post_ra>
